<compile_context>
chip_gen: v6e
topology: v6e:2x2x1
jax: 0.10.0
libtpu: 0.0.40
codegen_flags: <defaults>
</compile_context>

<pallas_src>
import math

import jax
import jax.numpy as jnp
from jax.experimental import pallas as pl
from jax.experimental.pallas import tpu as pltpu

BATCH = 2
SEQ = 8
D_MODEL = 32
D_FF = 128
EPS = 1e-6
DROPOUT_P = 0.1  # TODO(synk): dropout is identity at inference (eval mode); no RNG in kernel.


# ---------------------------------------------------------------------------
# Fused kernel (single grid step over all B*S tokens):
#   Linear(d_model->d_ff) + ReLU + Linear(d_ff->d_model)
#   + residual add + torch-style LayerNorm.
# ---------------------------------------------------------------------------
def _ffn_kernel(x_ref, w1_ref, b1_ref, w2_ref, b2_ref, g_ref, beta_ref, o_ref):
    x = x_ref[...]                                                   # (N, D)

    # conv1 (kernel_size=1) == x @ W1^T + b1 ; W1 stored pre-transposed (D, FF).
    h = jnp.dot(x, w1_ref[...], preferred_element_type=jnp.float32) + b1_ref[...]
    h = jnp.maximum(h, 0.0)                                          # ReLU

    # conv2 (kernel_size=1) == h @ W2^T + b2 ; W2 stored pre-transposed (FF, D).
    y = jnp.dot(h, w2_ref[...], preferred_element_type=jnp.float32) + b2_ref[...]

    # residual + torch LayerNormalization (std with N-1, eps added to std)
    z = x + y
    d = z.shape[-1]
    mean = jnp.mean(z, axis=-1, keepdims=True)
    centered = z - mean
    var_unbiased = jnp.sum(centered * centered, axis=-1, keepdims=True) / (d - 1)
    std = jnp.sqrt(var_unbiased)
    ln = centered / (std + EPS)
    o_ref[...] = (g_ref[...] * ln + beta_ref[...]).astype(o_ref.dtype)


def poswise_ffn(params, inputs):
    """inputs: (B, S, d_model) -> (B, S, d_model). One fused pallas_call, one grid step."""
    B, S, D = inputs.shape
    w1_t, b1 = params["conv1"]        # w1_t: (D, FF),  b1: (1, FF)   (pre-shaped at init)
    w2_t, b2 = params["conv2"]        # w2_t: (FF, D),  b2: (1, D)
    gamma, beta = params["ln"]        # (1, D), (1, D)
    FF = w1_t.shape[1]
    N = B * S

    x2d = inputs.reshape(N, D)        # contiguous reshape -> free bitcast, no transpose

    flops = 2 * N * D * FF + 2 * N * FF * D + 8 * N * D   # matmuls + epilogue (approx)
    bytes_accessed = 4 * (N * D * 2 + D * FF + FF * D + FF + 3 * D)

    out2d = pl.pallas_call(
        _ffn_kernel,
        out_shape=jax.ShapeDtypeStruct((N, D), inputs.dtype),
        grid_spec=pltpu.PrefetchScalarGridSpec(
            num_scalar_prefetch=0,
            grid=(1,),                                        # single fused step
            in_specs=[
                pl.BlockSpec((N, D), lambda i: (0, 0)),       # x (all tokens)
                pl.BlockSpec((D, FF), lambda i: (0, 0)),      # W1^T
                pl.BlockSpec((1, FF), lambda i: (0, 0)),      # b1
                pl.BlockSpec((FF, D), lambda i: (0, 0)),      # W2^T
                pl.BlockSpec((1, D), lambda i: (0, 0)),       # b2
                pl.BlockSpec((1, D), lambda i: (0, 0)),       # gamma
                pl.BlockSpec((1, D), lambda i: (0, 0)),       # beta
            ],
            out_specs=pl.BlockSpec((N, D), lambda i: (0, 0)),
        ),
        cost_estimate=pl.CostEstimate(
            flops=flops, transcendentals=N, bytes_accessed=bytes_accessed),
    )(x2d, w1_t, b1, w2_t, b2, gamma, beta)

    return out2d.reshape(B, S, D)


# ---------------------------------------------------------------------------
# Parameter init mimicking nn.Conv1d(k=1) / LayerNormalization.
# Weights are stored PRE-TRANSPOSED (D_in, D_out) and biases / gamma / beta
# pre-shaped to (1, D) so the per-call wrapper does no layout work.
# ---------------------------------------------------------------------------
def init_params(key, d_model, d_ff):
    k1w, k1b, k2w, k2b = jax.random.split(key, 4)
    bound1 = 1.0 / math.sqrt(d_model)   # Conv1d fan_in = in_channels * kernel_size
    bound2 = 1.0 / math.sqrt(d_ff)
    # torch layouts: conv1.weight (d_ff, d_model), conv2.weight (d_model, d_ff)
    w1 = jax.random.uniform(k1w, (d_ff, d_model), jnp.float32, -bound1, bound1)
    b1 = jax.random.uniform(k1b, (d_ff,), jnp.float32, -bound1, bound1)
    w2 = jax.random.uniform(k2w, (d_model, d_ff), jnp.float32, -bound2, bound2)
    b2 = jax.random.uniform(k2b, (d_model,), jnp.float32, -bound2, bound2)
    return {
        "conv1": (w1.T, b1.reshape(1, -1)),                          # (D, FF), (1, FF)
        "conv2": (w2.T, b2.reshape(1, -1)),                          # (FF, D), (1, D)
        "ln": (jnp.ones((1, d_model), jnp.float32),
               jnp.zeros((1, d_model), jnp.float32)),
    }


# ---------------------------------------------------------------------------
# Pure-JAX reference (torch semantics) for sanity check
# ---------------------------------------------------------------------------
def reference(params, inputs):
    w1_t, b1 = params["conv1"]
    w2_t, b2 = params["conv2"]
    gamma, beta = params["ln"]
    h = jnp.maximum(inputs @ w1_t + b1, 0.0)
    y = h @ w2_t + b2
    z = inputs + y
    mean = jnp.mean(z, axis=-1, keepdims=True)
    std = jnp.sqrt(jnp.sum((z - mean) ** 2, axis=-1, keepdims=True) / (z.shape[-1] - 1))
    return gamma * ((z - mean) / (std + EPS)) + beta


if __name__ == "__main__":
    root = jax.random.PRNGKey(0)
    k_params, k_x = jax.random.split(root, 2)

    params = init_params(k_params, D_MODEL, D_FF)
    inputs = jax.random.normal(k_x, (BATCH, SEQ, D_MODEL), jnp.float32)

    out = poswise_ffn(params, inputs)
    out = jax.block_until_ready(out)

    ref = reference(params, inputs)
    assert out.shape == (BATCH, SEQ, D_MODEL)
    assert jnp.allclose(out, ref, atol=1e-4, rtol=1e-4), "mismatch vs reference"

    print("KERNEL_OK")
</pallas_src>

<mosaic_0001>
module attributes {stable_mosaic.version = 11 : i64} {
  func.func @_ffn_kernel(%arg0: i32, %arg1: memref<16x32xf32, #tpu.memory_space<vmem>>, %arg2: memref<32x128xf32, #tpu.memory_space<vmem>>, %arg3: memref<1x128xf32, #tpu.memory_space<vmem>>, %arg4: memref<128x32xf32, #tpu.memory_space<vmem>>, %arg5: memref<1x32xf32, #tpu.memory_space<vmem>>, %arg6: memref<1x32xf32, #tpu.memory_space<vmem>>, %arg7: memref<1x32xf32, #tpu.memory_space<vmem>>, %arg8: memref<16x32xf32, #tpu.memory_space<vmem>>) attributes {dimension_semantics = [#tpu.dimension_semantics<arbitrary>], iteration_bounds = array<i64: 1>, scalar_prefetch = 0 : i64, scratch_operands = 0 : i64, tpu.core_type = #tpu.core_type<tc>, window_params = [{pipeline_mode = #tpu.pipeline_mode<synchronous>, transform_indices = @transform_0, window_bounds = array<i64: 16, 32>}, {pipeline_mode = #tpu.pipeline_mode<synchronous>, transform_indices = @transform_1, window_bounds = array<i64: 32, 128>}, {pipeline_mode = #tpu.pipeline_mode<synchronous>, transform_indices = @transform_2, window_bounds = array<i64: 1, 128>}, {pipeline_mode = #tpu.pipeline_mode<synchronous>, transform_indices = @transform_3, window_bounds = array<i64: 128, 32>}, {pipeline_mode = #tpu.pipeline_mode<synchronous>, transform_indices = @transform_4, window_bounds = array<i64: 1, 32>}, {pipeline_mode = #tpu.pipeline_mode<synchronous>, transform_indices = @transform_5, window_bounds = array<i64: 1, 32>}, {pipeline_mode = #tpu.pipeline_mode<synchronous>, transform_indices = @transform_6, window_bounds = array<i64: 1, 32>}, {pipeline_mode = #tpu.pipeline_mode<synchronous>, transform_indices = @transform_7, window_bounds = array<i64: 16, 32>}]} {
    %c0 = arith.constant 0 : index
    %c0_0 = arith.constant 0 : index
    %0 = vector.load %arg1[%c0, %c0_0] : memref<16x32xf32, #tpu.memory_space<vmem>>, vector<16x32xf32>
    %c0_1 = arith.constant 0 : index
    %c0_2 = arith.constant 0 : index
    %1 = vector.load %arg2[%c0_1, %c0_2] : memref<32x128xf32, #tpu.memory_space<vmem>>, vector<32x128xf32>
    %cst = arith.constant dense<0.000000e+00> : vector<16x128xf32>
    %2 = tpu.matmul %0, %1, %cst {dimension_numbers = #tpu.dot_dimension_numbers<[1], [0], [0], [1], [0, 0, 1, 1], [], []>} : vector<16x32xf32>, vector<32x128xf32>, vector<16x128xf32> -> vector<16x128xf32>
    %c0_3 = arith.constant 0 : index
    %c0_4 = arith.constant 0 : index
    %3 = vector.load %arg3[%c0_3, %c0_4] : memref<1x128xf32, #tpu.memory_space<vmem>>, vector<1x128xf32>
    %4 = vector.broadcast %3 : vector<1x128xf32> to vector<16x128xf32>
    %5 = arith.addf %2, %4 : vector<16x128xf32>
    %cst_5 = arith.constant 0.000000e+00 : f32
    %6 = vector.broadcast %cst_5 : f32 to vector<16x128xf32>
    %7 = arith.maximumf %5, %6 : vector<16x128xf32>
    %c0_6 = arith.constant 0 : index
    %c0_7 = arith.constant 0 : index
    %8 = vector.load %arg4[%c0_6, %c0_7] : memref<128x32xf32, #tpu.memory_space<vmem>>, vector<128x32xf32>
    %cst_8 = arith.constant dense<0.000000e+00> : vector<16x32xf32>
    %9 = tpu.matmul %7, %8, %cst_8 {dimension_numbers = #tpu.dot_dimension_numbers<[1], [0], [0], [1], [0, 0, 1, 1], [], []>} : vector<16x128xf32>, vector<128x32xf32>, vector<16x32xf32> -> vector<16x32xf32>
    %c0_9 = arith.constant 0 : index
    %c0_10 = arith.constant 0 : index
    %10 = vector.load %arg5[%c0_9, %c0_10] : memref<1x32xf32, #tpu.memory_space<vmem>>, vector<1x32xf32>
    %11 = vector.broadcast %10 : vector<1x32xf32> to vector<16x32xf32>
    %12 = arith.addf %9, %11 : vector<16x32xf32>
    %13 = arith.addf %0, %12 : vector<16x32xf32>
    %cst_11 = arith.constant dense<0.000000e+00> : vector<16xf32>
    %14 = vector.multi_reduction <add>, %13, %cst_11 [1] : vector<16x32xf32> to vector<16xf32>
    %15 = vector.shape_cast %14 : vector<16xf32> to vector<16x1xf32>
    %cst_12 = arith.constant 3.200000e+01 : f32
    %16 = vector.broadcast %cst_12 : f32 to vector<16x1xf32>
    %17 = arith.divf %15, %16 : vector<16x1xf32>
    %18 = vector.broadcast %17 : vector<16x1xf32> to vector<16x32xf32>
    %19 = arith.subf %13, %18 : vector<16x32xf32>
    %20 = arith.mulf %19, %19 : vector<16x32xf32>
    %cst_13 = arith.constant dense<0.000000e+00> : vector<16xf32>
    %21 = vector.multi_reduction <add>, %20, %cst_13 [1] : vector<16x32xf32> to vector<16xf32>
    %22 = vector.shape_cast %21 : vector<16xf32> to vector<16x1xf32>
    %cst_14 = arith.constant 3.100000e+01 : f32
    %23 = vector.broadcast %cst_14 : f32 to vector<16x1xf32>
    %24 = arith.divf %22, %23 : vector<16x1xf32>
    %25 = math.sqrt %24 : vector<16x1xf32>
    %cst_15 = arith.constant 9.99999997E-7 : f32
    %26 = vector.broadcast %cst_15 : f32 to vector<16x1xf32>
    %27 = arith.addf %25, %26 : vector<16x1xf32>
    %28 = vector.broadcast %27 : vector<16x1xf32> to vector<16x32xf32>
    %29 = arith.divf %19, %28 : vector<16x32xf32>
    %c0_16 = arith.constant 0 : index
    %c0_17 = arith.constant 0 : index
    %30 = vector.load %arg6[%c0_16, %c0_17] : memref<1x32xf32, #tpu.memory_space<vmem>>, vector<1x32xf32>
    %31 = vector.broadcast %30 : vector<1x32xf32> to vector<16x32xf32>
    %32 = arith.mulf %31, %29 : vector<16x32xf32>
    %c0_18 = arith.constant 0 : index
    %c0_19 = arith.constant 0 : index
    %33 = vector.load %arg7[%c0_18, %c0_19] : memref<1x32xf32, #tpu.memory_space<vmem>>, vector<1x32xf32>
    %34 = vector.broadcast %33 : vector<1x32xf32> to vector<16x32xf32>
    %35 = arith.addf %32, %34 : vector<16x32xf32>
    %c0_20 = arith.constant 0 : index
    %c0_21 = arith.constant 0 : index
    %36 = vector.load %arg8[%c0_20, %c0_21] : memref<16x32xf32, #tpu.memory_space<vmem>>, vector<16x32xf32>
    tpu.vector_store %arg8[%c0_20, %c0_21], %35 {strides = array<i32>} : memref<16x32xf32, #tpu.memory_space<vmem>>, vector<16x32xf32>,
    return
  }
  func.func @transform_0(%arg0: i32) -> (i32, i32) {
    %c0_i32 = arith.constant 0 : i32
    %c0_i32_0 = arith.constant 0 : i32
    %c0_i32_1 = arith.constant 0 : i32
    return %c0_i32, %c0_i32_0 : i32, i32
  }
  func.func @transform_1(%arg0: i32) -> (i32, i32) {
    %c0_i32 = arith.constant 0 : i32
    %c0_i32_0 = arith.constant 0 : i32
    %c0_i32_1 = arith.constant 0 : i32
    return %c0_i32, %c0_i32_0 : i32, i32
  }
  func.func @transform_2(%arg0: i32) -> (i32, i32) {
    %c0_i32 = arith.constant 0 : i32
    %c0_i32_0 = arith.constant 0 : i32
    %c0_i32_1 = arith.constant 0 : i32
    return %c0_i32, %c0_i32_0 : i32, i32
  }
  func.func @transform_3(%arg0: i32) -> (i32, i32) {
    %c0_i32 = arith.constant 0 : i32
    %c0_i32_0 = arith.constant 0 : i32
    %c0_i32_1 = arith.constant 0 : i32
    return %c0_i32, %c0_i32_0 : i32, i32
  }
  func.func @transform_4(%arg0: i32) -> (i32, i32) {
    %c0_i32 = arith.constant 0 : i32
    %c0_i32_0 = arith.constant 0 : i32
    %c0_i32_1 = arith.constant 0 : i32
    return %c0_i32, %c0_i32_0 : i32, i32
  }
  func.func @transform_5(%arg0: i32) -> (i32, i32) {
    %c0_i32 = arith.constant 0 : i32
    %c0_i32_0 = arith.constant 0 : i32
    %c0_i32_1 = arith.constant 0 : i32
    return %c0_i32, %c0_i32_0 : i32, i32
  }
  func.func @transform_6(%arg0: i32) -> (i32, i32) {
    %c0_i32 = arith.constant 0 : i32
    %c0_i32_0 = arith.constant 0 : i32
    %c0_i32_1 = arith.constant 0 : i32
    return %c0_i32, %c0_i32_0 : i32, i32
  }
  func.func @transform_7(%arg0: i32) -> (i32, i32) {
    %c0_i32 = arith.constant 0 : i32
    %c0_i32_0 = arith.constant 0 : i32
    %c0_i32_1 = arith.constant 0 : i32
    return %c0_i32, %c0_i32_0 : i32, i32
  }
}

</mosaic_0001>

<bundles_post_ra>
// kernel: tpu_custom_call.1
= control target key start
LH: loop header
LB: loop body
LE: loop exit
PB: predicated region body
PF: predicated region fallthrough
CT: control target
= control target key end

     0   :  { %vm40_vm0 = vcmask 261120   ;;  %s551_s0 = inlined_call_operand.vmem [shape: f32[16,32], index: 0, kind: input, shape index: {}]   ;;  %s552_s1 = inlined_call_operand.vmem [shape: f32[32,128], index: 1, kind: input, shape index: {}]   ;;  %s553_s2 = inlined_call_operand.vmem [shape: f32[1,128], index: 2, kind: input, shape index: {}]   ;;  %s554_s3 = inlined_call_operand.vmem [shape: f32[128,32], index: 3, kind: input, shape index: {}]   ;;  %s555_s4 = inlined_call_operand.vmem [shape: f32[1,32], index: 4, kind: input, shape index: {}]   ;;  %s556_s5 = inlined_call_operand.vmem [shape: f32[1,32], index: 5, kind: input, shape index: {}]   ;;  %s557_s6 = inlined_call_operand.vmem [shape: f32[1,32], index: 6, kind: input, shape index: {}]   ;;  %s558_s7 = inlined_call_operand.hbm [shape: f32[16,32], index: 7, kind: output, shape index: {}]  }
   0x1   :  { %v32_v0 = vld [vmem:[%s552_s1 + $0x18] sm:$0xff]  ;;  %v31_v1 = vld [vmem:[%s552_s1 + $0x10] sm:$0xff]  ;;  %v463_v2 = vld [vmem:[%s551_s0] sm:$0xff] }
   0x2   :  { %332 = vmatprep.subr.mxu0 %v32_v0  ;;  %v30_v3 = vld [vmem:[%s552_s1 + $0x8] sm:$0xff]  ;;  %340 = vmatprep.mubr.msk.f32.mxu0 %vm40_vm0, %v463_v2  ;;  %v139_v4 = vld [vmem:[%s554_s3 + $0x78] sm:$0xff]  ;;  %v138_v5 = vld [vmem:[%s554_s3 + $0x70] sm:$0xff] }
   0x3   :  { %333 = vmatpush3.msra.mxu0 %v32_v0  ;;  %343 = vmatprep.subr.mxu1 %v139_v4  ;;  %v29_v6 = vld [vmem:[%s552_s1] sm:$0xff]  ;;  %v137_v7 = vld [vmem:[%s554_s3 + $0x68] sm:$0xff] }
   0x4   :  { %334 = vmatprep.subr.mxu0 %v31_v1  ;;  %344 = vmatpush3.msra.mxu1 %v139_v4  ;;  %v485_v8 = vld [vmem:[%s551_s0 + $0x8] sm:$0xff]  ;;  %v136_v9 = vld [vmem:[%s554_s3 + $0x60] sm:$0xff] }
   0x5   :  { %335 = vmatpush3.msra.mxu0 %v31_v1  ;;  %345 = vmatprep.subr.mxu1 %v138_v5 }
   0x6   :  { %336 = vmatprep.subr.mxu0 %v30_v3  ;;  %346 = vmatpush3.msra.mxu1 %v138_v5 }
   0x7   :  { %337 = vmatpush3.msra.mxu0 %v30_v3 }
   0x8   :  { %12 = vsyncpa [#allocation3], 0  ;;  %338 = vmatprep.subr.mxu0 %v29_v6  ;;  %347 = vmatprep.subr.mxu1 %v137_v7  ;;  %v135_v10 = vld [vmem:[%s554_s3 + $0x58] sm:$0xff]  ;;  %v134_v11 = vld [vmem:[%s554_s3 + $0x50] sm:$0xff]  ;;  %s411_s23 = smov [#allocation2]  }
   0x9   :  { %339 = vmatpush3.msra.mxu0 %v29_v6  ;;  %348 = vmatpush3.msra.mxu1 %v137_v7  ;;  %v133_v12 = vld [vmem:[%s554_s3 + $0x48] sm:$0xff]  ;;  %v132_v13 = vld [vmem:[%s554_s3 + $0x40] sm:$0xff]  ;;  %v131_v14 = vld [vmem:[%s554_s3 + $0x38] sm:$0xff]  ;;  %s291_s24 = sshll.u32 %s411_s23, 4  ;;  %s292_s24 = int_to_ptr.vmem [resolvable:$true] %s291_s24 }
   0xa   :  { %341 = vmatmul.mubr.msk.f32.vlgmr.msra.gmra.mxu0 %vm40_vm0, %v485_v8  ;;  %349 = vmatprep.subr.mxu1 %v136_v9  ;;  %v130_v15 = vld [vmem:[%s554_s3 + $0x30] sm:$0xff]  ;;  %v129_v16 = vld [vmem:[%s554_s3 + $0x28] sm:$0xff]  ;;  %v128_v17 = vld [vmem:[%s554_s3 + $0x20] sm:$0xff]  ;;  %s389_s25 = scalar_lea.vmem %s292_s24, 256  ;;  %p394_p1 = scmp.lt.s32.totalorder %s292_s24, %s292_s24 }
   0xb   :  { %350 = vmatpush3.msra.mxu1 %v136_v9  ;;  %v127_v18 = vld [vmem:[%s554_s3 + $0x18] sm:$0xff]  ;;  %v126_v19 = vld [vmem:[%s554_s3 + $0x10] sm:$0xff]  ;;  %v125_v20 = vld [vmem:[%s554_s3 + $0x8] sm:$0xff]  ;;  %p390_p0 = scmp.ne.s32.totalorder %s292_s24, %s389_s25  ;;  %p395_p2 = scmp.lt.s32.totalorder %s389_s25, %s389_s25 }
   0xc   :  { %351 = vmatprep.subr.mxu1 %v135_v10  ;;  %v124_v21 = vld [vmem:[%s554_s3] sm:$0xff] }
   0xd   :  { %352 = vmatpush3.msra.mxu1 %v135_v10  ;;  %v302_v22 = vld [vmem:[%s553_s2] ss:$0 sm:$0xff]  ;;  %p396_p3 = por %p395_p2, %p394_p1 }
   0xe   :  { %353 = vmatprep.subr.mxu1 %v134_v11  ;;  %v305_v30 = vld [vmem:[%s555_s4] ss:$0 sm:$0xff] }
   0xf   :  { %354 = vmatpush3.msra.mxu1 %v134_v11  ;;  %v306_v1 = vld [vmem:[%s556_s5] ss:$0 sm:$0xff]  ;;  %p397_p4 = pnand %p396_p3, %p390_p0 }
  0x10   :  { %355 = vmatprep.subr.mxu1 %v133_v12  ;;  %v307_v3 = vld [vmem:[%s557_s6] ss:$0 sm:$0xff] }
  0x11   :  { %356 = vmatpush3.msra.mxu1 %v133_v12 }
  0x12   :  { %357 = vmatprep.subr.mxu1 %v132_v13 }
  0x13   :  { %358 = vmatpush3.msra.mxu1 %v132_v13 }
  0x14   :  { %359 = vmatprep.subr.mxu1 %v131_v14 }
  0x15   :  { %360 = vmatpush3.msra.mxu1 %v131_v14 }
  0x16   :  { %361 = vmatprep.subr.mxu1 %v130_v15 }
  0x17   :  { %362 = vmatpush3.msra.mxu1 %v130_v15 }
  0x18   :  { %363 = vmatprep.subr.mxu1 %v129_v16 }
  0x19   :  { %364 = vmatpush3.msra.mxu1 %v129_v16 }
  0x1a   :  { %365 = vmatprep.subr.mxu1 %v128_v17 }
  0x1b   :  { %366 = vmatpush3.msra.mxu1 %v128_v17 }
  0x1c   :  { %367 = vmatprep.subr.mxu1 %v127_v18 }
  0x1d   :  { %368 = vmatpush3.msra.mxu1 %v127_v18 }
  0x1e   :  { %369 = vmatprep.subr.mxu1 %v126_v19 }
  0x1f   :  { %370 = vmatpush3.msra.mxu1 %v126_v19 }
  0x20   :  { %371 = vmatprep.subr.mxu1 %v125_v20 }
  0x21   :  { %372 = vmatpush3.msra.mxu1 %v125_v20 }
  0x22   :  { %373 = vmatprep.subr.mxu1 %v124_v21 }
  0x23   :  { %374 = vmatpush3.msra.mxu1 %v124_v21 }
  0xca   :  { %v342_v23 = vpop.f32.mrf.mxu0 }
  0xcb   :  { %v119_v24 = vadd.f32 %v342_v23, %v302_v22 }
  0xcc   :  { %v113_v25 = vpop.f32.mrf.mxu0 }
  0xcd   :  { %v114_v26 = vadd.f32 %v302_v22, %v113_v25  ;;  %v123_v28 = vmax.f32 %v119_v24, 0.0 }
  0xcf   :  { %v122_v27 = vmax.f32 %v114_v26, 0.0 }
  0xd1   :  { %375 = vmatprep.mubr.f32.mxu1 %v122_v27 }
  0xd2   :  { %376 = vmatmul.mubr.f32.vlgmr.msra.gmra.mxu1 %v123_v28 }
 0x192   :  { %v377_v29 = vpop.f32.mrf.mxu1 }
 0x193   :  { %v219_v32 = vadd.f32 %v377_v29, %v305_v30 }
 0x194   :  { %v213_v31 = vpop.f32.mrf.mxu1 }
 0x195   :  { %v214_v33 = vadd.f32 %v305_v30, %v213_v31  ;;  %v223_v36 = vadd.f32 %v219_v32, %v485_v8 }
 0x197   :  { %v222_v34 = vadd.f32 %v214_v33, %v463_v2  ;;  %v227_v37 = vsel %vm40_vm0, %v223_v36, 0.0 }
 0x199   :  { %v224_v35 = vsel %vm40_vm0, %v222_v34, 0.0 }
 0x19a   :  { %225 = vadd.xlane.f32.xlu0 %v224_v35 }
 0x19e   :  { %228 = vadd.xlane.f32.xlu0 %v227_v37 }
 0x223   :  { %v226_v38 = vpop.xlane.xlu0 %225 }
 0x224   :  { %v231_v39 = vmul.f32 0.03125, %v226_v38 }
 0x226   :  { %v233_v40 = vsub.f32 %v222_v34, %v231_v39 }
 0x227   :  { %v229_v41 = vpop.xlane.xlu0 %228 }
 0x228   :  { %v232_v42 = vmul.f32 0.03125, %v229_v41  ;;  %v235_v43 = vmul.f32 %v233_v40, %v233_v40 }
 0x22a   :  { %v234_v44 = vsub.f32 %v223_v36, %v232_v42  ;;  %v237_v45 = vsel %vm40_vm0, %v235_v43, 0.0 }
 0x22b   :  { %238 = vadd.xlane.f32.xlu1 %v237_v45 }
 0x22c   :  { %v236_v46 = vmul.f32 %v234_v44, %v234_v44 }
 0x22e   :  { %v240_v47 = vsel %vm40_vm0, %v236_v46, 0.0 }
 0x22f   :  { %241 = vadd.xlane.f32.xlu1 %v240_v47 }
 0x2b4   :  { %v239_v48 = vpop.xlane.xlu1 %238 }
 0x2b5   :  { %v244_v49 = vmul.f32 0.032258064, %v239_v48 }
 0x2b7   :  { %381 = vrsqrt.f32 %v244_v49  ;;  %vm248_vm1 = vcmp.eq.f32.partialorder %v244_v49, inf  ;;  %v251_v54 = vand.u32 2147483648, %v244_v49  ;;  %vm250_vm2 = vcmp.eq.f32.partialorder %v244_v49, 0.0 }
 0x2b8   :  { %v242_v50 = vpop.xlane.xlu1 %241 }
 0x2b9   :  { %v245_v51 = vmul.f32 0.032258064, %v242_v50 }
 0x2bb   :  { %383 = vrsqrt.f32 %v245_v51  ;;  %vm255_vm3 = vcmp.eq.f32.partialorder %v245_v51, inf  ;;  %v258_v60 = vand.u32 2147483648, %v245_v51  ;;  %vm257_vm4 = vcmp.eq.f32.partialorder %v245_v51, 0.0 }
 0x2c4   :  { %v382_v52 = vpop.eup %381 }
 0x2c5   :  { %v247_v53 = vmul.f32 %v382_v52, %v244_v49 }
 0x2c7   :  { %v249_v55 = vsel %vm248_vm1, %v244_v49, %v247_v53 }
 0x2c8   :  { %v384_v56 = vpop.eup %383  ;;  %v252_v57 = vsel %vm250_vm2, %v251_v54, %v249_v55 }
 0x2c9   :  { %v260_v58 = vadd.f32 1e-06, %v252_v57  ;;  %v254_v59 = vmul.f32 %v384_v56, %v245_v51 }
 0x2cb   :  { %385 = vrcp.f32 %v260_v58  ;;  %v256_v61 = vsel %vm255_vm3, %v245_v51, %v254_v59 }
 0x2cc   :  { %v259_v62 = vsel %vm257_vm4, %v258_v60, %v256_v61 }
 0x2cd   :  { %v261_v63 = vadd.f32 1e-06, %v259_v62 }
 0x2cf   :  { %387 = vrcp.f32 %v261_v63 }
 0x2d8   :  { %v386_v0 = vpop.eup %385 }
 0x2d9   :  { %v263_v2 = vmul.f32 %v386_v0, %v233_v40 }
 0x2db   :  { %v273_v4 = vmul.f32 %v306_v1, %v263_v2 }
 0x2dc   :  { %v388_v5 = vpop.eup %387 }
 0x2dd   :  { %v265_v6 = vmul.f32 %v388_v5, %v234_v44  ;;  %v282_v7 = vadd.f32 %v307_v3, %v273_v4 }
 0x2df   :  { %v274_v8 = vmul.f32 %v306_v1, %v265_v6  ;;  %284 = vst.msk [vmem:[#allocation2] sm:$0xff] %vm40_vm0, %v282_v7 }
 0x2e1   :  { %v283_v9 = vadd.f32 %v307_v3, %v274_v8 }
 0x2e3   :  { %285 = vst.msk [vmem:[#allocation2 + $0x8] sm:$0xff] %vm40_vm0, %v283_v9 }
 0x2e4   :  { %400 = shalt.err (!%p397_p4)
}
 0x2e5   :  { %s412_s5 = smov 128   ;;  %s413_s6 = smov 8  }
 0x2e6   :  { %297 = dma.vmem_to_hbm [thread:$0]  %s292_s24, 256, %s558_s7, [#allocation3], %s412_s5, %s412_s5, %s413_s6  }
 0x2e7   :  { %409 = dma.done.wait [#allocation3], 256  }
 0x2e8   :  { %410 = vsyncadd [#allocation3], 4294967040 }
 0x2e9   :  { %301 = vsyncpa [#allocation3], 1 }

</bundles_post_ra>
